<compile_context>
chip_gen: v6e
topology: v6e:2x2x1
jax: 0.10.0
libtpu: 0.0.40
codegen_flags: <defaults>
</compile_context>

<pallas_src>
import jax
import jax.numpy as jnp
from jax.experimental import pallas as pl
from jax.experimental.pallas import tpu as pltpu


def _vq_kernel(cls_ref, e_ref, wsq_ref, wt_ref, colcls_ref, idx_ref):
    """One token tile: dist = 0.5||w||^2 - e.w, mask to the row's codebook
    range via a single class-equality compare, emit the argmin index."""
    e = e_ref[...]                                            # (tm, D) f32

    # bf16 inputs, f32 accumulation on the MXU; codebook is pre-transposed to
    # (D, K) in the wrapper so no in-kernel transpose is needed.
    cross = jnp.dot(e.astype(wt_ref.dtype), wt_ref[...],
                    preferred_element_type=jnp.float32)       # (tm, K)

    # 0.5*||w||^2 - e.w  ==  0.5 * (||w||^2 - 2 e.w): argmin-equivalent.
    dist = wsq_ref[...] - cross                               # (tm, K)

    # Single-compare range restriction: column's class must equal row's class.
    valid = colcls_ref[...] == cls_ref[...]                   # (1,K)==(tm,1) -> (tm,K)
    masked = jnp.where(valid, dist, jnp.inf)

    idx_ref[...] = jnp.argmin(masked, axis=1, keepdims=True).astype(jnp.int32)


def _round_up(a, b):
    return (a + b - 1) // b * b


def vector_quantizer_forward(x, e, embeddings, commitment_cost, *, tm=512):
    n, d = e.shape
    k = embeddings.shape[0]

    # Cap the tile near N for small inputs (keeps padded-row waste small);
    # tm stays a multiple of 8 for the (8, 128) sublane rule.
    tm = min(tm, _round_up(n, 8))
    num_tiles = (n + tm - 1) // tm
    n_pad = num_tiles * tm

    # Per-row class id, mirroring the PyTorch atom-type tests exactly.
    atom = x[:, 0]
    row_class = jnp.where(atom == 5, 0,
                jnp.where(atom == 6, 1,
                jnp.where(atom == 7, 2, 3))).astype(jnp.int32)[:, None]
    # Padded rows get class -1 (matches nothing; their indices are dropped).
    row_class = jnp.pad(row_class, ((0, n_pad - n), (0, 0)), constant_values=-1)

    e_p = jnp.pad(e.astype(jnp.float32), ((0, n_pad - n), (0, 0)))

    # Per-column class map, mirroring the module's half-open slices exactly
    # (columns 377, 433, 488, 511 are unreachable there too -> class -2).
    col = jnp.arange(k, dtype=jnp.int32)
    col_class = jnp.full((k,), -2, dtype=jnp.int32)
    for cls, (lo, hi) in enumerate([(0, 377), (378, 433), (434, 488), (489, 511)]):
        col_class = jnp.where((col >= lo) & (col < hi), cls, col_class)
    col_class = col_class[None, :]                            # (1, K) int32

    w = embeddings.astype(jnp.float32)
    w_t_bf = w.T.astype(jnp.bfloat16)                         # (D, K) pre-transposed
    w_sq_half = 0.5 * jnp.sum(w * w, axis=1)[None, :]         # (1, K) f32

    idx_pad = pl.pallas_call(
        _vq_kernel,
        grid=(num_tiles,),
        out_shape=jax.ShapeDtypeStruct((n_pad, 1), jnp.int32),
        in_specs=[
            pl.BlockSpec((tm, 1), lambda i: (i, 0)),   # row class      (tiled)
            pl.BlockSpec((tm, d), lambda i: (i, 0)),   # e              (tiled)
            pl.BlockSpec((1, k), lambda i: (0, 0)),    # 0.5*||w||^2    (resident)
            pl.BlockSpec((d, k), lambda i: (0, 0)),    # codebook^T bf16(resident)
            pl.BlockSpec((1, k), lambda i: (0, 0)),    # column classes (resident)
        ],
        out_specs=pl.BlockSpec((tm, 1), lambda i: (i, 0)),    # argmin indices
        compiler_params=pltpu.CompilerParams(
            dimension_semantics=("parallel",),
            vmem_limit_bytes=32 * 1024 * 1024,
        ),
    )(row_class, e_p, w_sq_half, w_t_bf, col_class)

    idx = idx_pad[:n, 0]
    # Exact codebook gather + loss in the wrapper (exact f32, cheap XLA ops).
    quantized = jnp.take(w, idx, axis=0)                      # (n, D) f32, exact rows
    diff = quantized - e.astype(jnp.float32)
    loss = (1.0 + commitment_cost) * jnp.mean(diff * diff)
    return quantized, loss


def _reference_forward(x, e, embeddings, commitment_cost):
    """Pure-JAX reference mirroring the PyTorch forward (bf16 cross term to
    match the kernel's MXU numerics; ranges/argmin/gather/loss identical)."""
    atom = x[:, 0]
    lo = jnp.where(atom == 5, 0,
         jnp.where(atom == 6, 378, jnp.where(atom == 7, 434, 489)))[:, None]
    hi = jnp.where(atom == 5, 377,
         jnp.where(atom == 6, 433, jnp.where(atom == 7, 488, 511)))[:, None]
    w_sq = jnp.sum(embeddings ** 2, axis=1)[None, :]
    cross = jnp.dot(e.astype(jnp.bfloat16), embeddings.T.astype(jnp.bfloat16),
                    preferred_element_type=jnp.float32)
    dist = w_sq - 2.0 * cross                                 # ||e||^2 argmin-invariant
    col = jnp.arange(embeddings.shape[0])[None, :]
    masked = jnp.where((col >= lo) & (col < hi), dist, jnp.inf)
    idx = jnp.argmin(masked, axis=1)
    quantized = embeddings[idx]
    mse = jnp.mean((quantized - e) ** 2)
    return quantized, (1.0 + commitment_cost) * mse


if __name__ == "__main__":
    embedding_dim = 64
    num_embeddings = 512   # module slices up to index 511, so K >= 512
    commitment_cost = 0.25
    n_feats = 4

    key = jax.random.PRNGKey(0)
    k_w, k_e1, k_t1, k_x1, k_e2, k_t2, k_x2 = jax.random.split(key, 7)

    # Deterministic "nn.Embedding" weights ~ N(0, 1).
    embeddings = jax.random.normal(k_w, (num_embeddings, embedding_dim),
                                   dtype=jnp.float32)

    def make_inputs(ke, kt, kx, n_tokens):
        e = jax.random.normal(ke, (n_tokens, embedding_dim), dtype=jnp.float32)
        atom_types = jax.random.randint(kt, (n_tokens,), 5, 9).astype(jnp.float32)
        x = jax.random.normal(kx, (n_tokens, n_feats), dtype=jnp.float32)
        return x.at[:, 0].set(atom_types), e

    # Small test (matches harness scale) + a multi-tile ragged-N test.
    for ke, kt, kx, n_tokens in [(k_e1, k_t1, k_x1, 16), (k_e2, k_t2, k_x2, 600)]:
        x, e = make_inputs(ke, kt, kx, n_tokens)
        quantized, loss = vector_quantizer_forward(x, e, embeddings,
                                                   commitment_cost)
        jax.block_until_ready((quantized, loss))

        q_ref, loss_ref = _reference_forward(x, e, embeddings, commitment_cost)
        assert quantized.shape == (n_tokens, embedding_dim)
        assert jnp.allclose(quantized, q_ref, atol=1e-4, rtol=1e-4), n_tokens
        assert jnp.allclose(loss, loss_ref, atol=1e-4, rtol=1e-4), n_tokens

    print("KERNEL_OK")
</pallas_src>

<mosaic_0001>
module attributes {stable_mosaic.version = 11 : i64} {
  func.func @_vq_kernel(%arg0: i32, %arg1: memref<16x1xi32, #tpu.memory_space<vmem>>, %arg2: memref<16x64xf32, #tpu.memory_space<vmem>>, %arg3: memref<1x512xf32, #tpu.memory_space<vmem>>, %arg4: memref<64x512xbf16, #tpu.memory_space<vmem>>, %arg5: memref<1x512xi32, #tpu.memory_space<vmem>>, %arg6: memref<16x1xi32, #tpu.memory_space<vmem>>) attributes {dimension_semantics = [#tpu.dimension_semantics<parallel>], iteration_bounds = array<i64: 1>, scalar_prefetch = 0 : i64, scratch_operands = 0 : i64, tpu.core_type = #tpu.core_type<tc>, window_params = [{transform_indices = @transform_0, window_bounds = array<i64: 16, 1>}, {transform_indices = @transform_1, window_bounds = array<i64: 16, 64>}, {pipeline_mode = #tpu.pipeline_mode<synchronous>, transform_indices = @transform_2, window_bounds = array<i64: 1, 512>}, {pipeline_mode = #tpu.pipeline_mode<synchronous>, transform_indices = @transform_3, window_bounds = array<i64: 64, 512>}, {pipeline_mode = #tpu.pipeline_mode<synchronous>, transform_indices = @transform_4, window_bounds = array<i64: 1, 512>}, {transform_indices = @transform_5, window_bounds = array<i64: 16, 1>}]} {
    %c0 = arith.constant 0 : index
    %c0_0 = arith.constant 0 : index
    %0 = vector.load %arg2[%c0, %c0_0] : memref<16x64xf32, #tpu.memory_space<vmem>>, vector<16x64xf32>
    %1 = arith.truncf %0 : vector<16x64xf32> to vector<16x64xbf16>
    %c0_1 = arith.constant 0 : index
    %c0_2 = arith.constant 0 : index
    %2 = vector.load %arg4[%c0_1, %c0_2] : memref<64x512xbf16, #tpu.memory_space<vmem>>, vector<64x512xbf16>
    %cst = arith.constant dense<0.000000e+00> : vector<16x512xf32>
    %3 = tpu.matmul %1, %2, %cst {dimension_numbers = #tpu.dot_dimension_numbers<[1], [0], [0], [1], [0, 0, 1, 1], [], []>} : vector<16x64xbf16>, vector<64x512xbf16>, vector<16x512xf32> -> vector<16x512xf32>
    %c0_3 = arith.constant 0 : index
    %c0_4 = arith.constant 0 : index
    %4 = vector.load %arg3[%c0_3, %c0_4] : memref<1x512xf32, #tpu.memory_space<vmem>>, vector<1x512xf32>
    %5 = vector.broadcast %4 : vector<1x512xf32> to vector<16x512xf32>
    %6 = arith.subf %5, %3 : vector<16x512xf32>
    %c0_5 = arith.constant 0 : index
    %c0_6 = arith.constant 0 : index
    %7 = vector.load %arg5[%c0_5, %c0_6] : memref<1x512xi32, #tpu.memory_space<vmem>>, vector<1x512xi32>
    %c0_7 = arith.constant 0 : index
    %c0_8 = arith.constant 0 : index
    %8 = vector.load %arg1[%c0_7, %c0_8] : memref<16x1xi32, #tpu.memory_space<vmem>>, vector<16x1xi32>
    %9 = vector.broadcast %7 : vector<1x512xi32> to vector<16x512xi32>
    %10 = vector.broadcast %8 : vector<16x1xi32> to vector<16x512xi32>
    %11 = arith.cmpi eq, %9, %10 : vector<16x512xi32>
    %cst_9 = arith.constant 0x7F800000 : f32
    %12 = vector.broadcast %cst_9 : f32 to vector<16x512xf32>
    %13 = arith.select %11, %6, %12 : vector<16x512xi1>, vector<16x512xf32>
    %14 = tpu.reduce_index %13 {axis = 1 : i32, kind = #tpu.reduction_kind<arg_min>} : vector<16x512xf32> -> vector<16xi32>
    %15 = vector.shape_cast %14 : vector<16xi32> to vector<16x1xi32>
    %c0_10 = arith.constant 0 : index
    %c0_11 = arith.constant 0 : index
    %16 = vector.load %arg6[%c0_10, %c0_11] : memref<16x1xi32, #tpu.memory_space<vmem>>, vector<16x1xi32>
    tpu.vector_store %arg6[%c0_10, %c0_11], %15 {strides = array<i32>} : memref<16x1xi32, #tpu.memory_space<vmem>>, vector<16x1xi32>,
    return
  }
  func.func @transform_0(%arg0: i32) -> (i32, i32) {
    %c0_i32 = arith.constant 0 : i32
    %c0_i32_0 = arith.constant 0 : i32
    return %arg0, %c0_i32 : i32, i32
  }
  func.func @transform_1(%arg0: i32) -> (i32, i32) {
    %c0_i32 = arith.constant 0 : i32
    %c0_i32_0 = arith.constant 0 : i32
    return %arg0, %c0_i32 : i32, i32
  }
  func.func @transform_2(%arg0: i32) -> (i32, i32) {
    %c0_i32 = arith.constant 0 : i32
    %c0_i32_0 = arith.constant 0 : i32
    %c0_i32_1 = arith.constant 0 : i32
    return %c0_i32, %c0_i32_0 : i32, i32
  }
  func.func @transform_3(%arg0: i32) -> (i32, i32) {
    %c0_i32 = arith.constant 0 : i32
    %c0_i32_0 = arith.constant 0 : i32
    %c0_i32_1 = arith.constant 0 : i32
    return %c0_i32, %c0_i32_0 : i32, i32
  }
  func.func @transform_4(%arg0: i32) -> (i32, i32) {
    %c0_i32 = arith.constant 0 : i32
    %c0_i32_0 = arith.constant 0 : i32
    %c0_i32_1 = arith.constant 0 : i32
    return %c0_i32, %c0_i32_0 : i32, i32
  }
  func.func @transform_5(%arg0: i32) -> (i32, i32) {
    %c0_i32 = arith.constant 0 : i32
    %c0_i32_0 = arith.constant 0 : i32
    return %arg0, %c0_i32 : i32, i32
  }
}

</mosaic_0001>

<bundles_post_ra>
// kernel: tpu_custom_call.1
= control target key start
LH: loop header
LB: loop body
LE: loop exit
PB: predicated region body
PF: predicated region fallthrough
CT: control target
= control target key end

     0   :  { %10 = vsyncpa [#allocation3], 0  ;;  %s408_s18 = smov [#allocation2]   ;;  %s469_s0 = inlined_call_operand.vmem [shape: s32[16,1], index: 0, kind: input, shape index: {}]   ;;  %s470_s1 = inlined_call_operand.vmem [shape: f32[16,64], index: 1, kind: input, shape index: {}]   ;;  %s471_s2 = inlined_call_operand.vmem [shape: f32[1,512], index: 2, kind: input, shape index: {}]   ;;  %s472_s3 = inlined_call_operand.hbm [shape: bf16[64,512], index: 3, kind: input, shape index: {}]   ;;  %s473_s4 = inlined_call_operand.vmem [shape: s32[1,512], index: 4, kind: input, shape index: {}]   ;;  %s474_s5 = inlined_call_operand.vmem [shape: s32[16,1], index: 5, kind: output, shape index: {}]  }
   0x1   :  { %s22_s19 = sshll.u32 %s408_s18, 4  ;;  %s23_s19 = int_to_ptr.vmem [resolvable:$true] %s22_s19 }
   0x2   :  { %s394_s20 = scalar_lea.vmem %s23_s19, 2048  ;;  %p399_p1 = scmp.lt.s32.totalorder %s23_s19, %s23_s19 }
   0x3   :  { %p395_p0 = scmp.ne.s32.totalorder %s23_s19, %s394_s20  ;;  %p400_p2 = scmp.lt.s32.totalorder %s394_s20, %s394_s20 }
   0x5   :  { %p401_p3 = por %p400_p2, %p399_p1 }
   0x7   :  { %p402_p4 = pnand %p401_p3, %p395_p0 }
   0x9   :  { %405 = shalt.err (!%p402_p4)
}
   0xa   :  { %s409_s21 = smov 256   ;;  %s410_s22 = smov 16  }
   0xb   :  { %28 = dma.hbm_to_vmem [thread:$0]  %s472_s3, 2048, %s23_s19, [#allocation3], %s409_s21, %s409_s21, %s410_s22  }
   0xc   :  { %406 = dma.done.wait [#allocation3], 2048  }
   0xd   :  { %407 = vsyncadd [#allocation3], 4294965248  ;;  %v411_v0 = vmov 0   ;;  %v362_v1 = vld [vmem:[#allocation2 + $0x64] ss:$16 sps:$4 sm:$0xff]   ;;  %v255_v16 = vld [vmem:[%s469_s0] sm:$0xff]  ;;  %v226_v22 = vlaneseq }
   0xe   :  { %170 = vmatprep.mubr.bf16.mxu0 %v411_v0  ;;  %213 = vmatprep.mubr.bf16.mxu1 %v411_v0  ;;  %v364_v2 = vld [vmem:[#allocation2 + $0x6c] ss:$16 sps:$4 sm:$0xff]   ;;  %v366_v3 = vld [vmem:[#allocation2 + $0x60] ss:$16 sps:$4 sm:$0xff]   ;;  %v367_v4 = vld [vmem:[#allocation2 + $0x68] ss:$16 sps:$4 sm:$0xff]  }
   0xf   :  { %358 = vset.pattern.permute.xlu0 %v411_v0  ;;  %146 = vmatprep.subr.bf16.mxu0 %v362_v1  ;;  %v368_v5 = vld [vmem:[#allocation2 + $0x44] ss:$16 sps:$4 sm:$0xff]   ;;  %v370_v6 = vld [vmem:[#allocation2 + $0x4c] ss:$16 sps:$4 sm:$0xff]   ;;  %v372_v7 = vld [vmem:[#allocation2 + $0x40] ss:$16 sps:$4 sm:$0xff]  }
  0x10   :  { %189 = vmatprep.subr.bf16.mxu1 %v364_v2  ;;  %147 = vmatpush1.bf16.msra.mxu0 %v366_v3  ;;  %v373_v8 = vld [vmem:[#allocation2 + $0x48] ss:$16 sps:$4 sm:$0xff]   ;;  %v374_v9 = vld [vmem:[#allocation2 + $0x24] ss:$16 sps:$4 sm:$0xff]   ;;  %v376_v10 = vld [vmem:[#allocation2 + $0x2c] ss:$16 sps:$4 sm:$0xff]  }
  0x11   :  { %190 = vmatpush1.bf16.msra.mxu1 %v367_v4  ;;  %148 = vmatprep.subr.bf16.mxu0 %v368_v5  ;;  %v378_v11 = vld [vmem:[#allocation2 + $0x20] ss:$16 sps:$4 sm:$0xff]   ;;  %v379_v12 = vld [vmem:[#allocation2 + $0x28] ss:$16 sps:$4 sm:$0xff]   ;;  %v380_v13 = vld [vmem:[#allocation2 + $0x4] ss:$16 sps:$4 sm:$0xff]  }
  0x12   :  { %191 = vmatprep.subr.bf16.mxu1 %v370_v6  ;;  %v382_v14 = vld [vmem:[#allocation2 + $0xc] ss:$16 sps:$4 sm:$0xff]   ;;  %v384_v15 = vld [vmem:[#allocation2] ss:$16 sps:$4 sm:$0xff]   ;;  %v385_v17 = vld [vmem:[#allocation2 + $0x8] ss:$16 sps:$4 sm:$0xff]   ;;  %274 = vperm.xlu0 %358, %v255_v16  }
  0x13   :  { %v35_v18 = vld [vmem:[%s470_s1] sm:$0xff]  ;;  %v36_v19 = vld [vmem:[%s470_s1 + $0x8] sm:$0xff]  ;;  %vm134_vm0 = vcmask 523264   ;;  %v227_v23 = vshrl.u32 %v226_v22, 7  ;;  %v296_v34 = vand.u32 127, %v226_v22  ;;  %vm328_vm15 = vcmask 7168  }
  0x14   :  { %149 = vmatpush1.bf16.msra.mxu0 %v372_v7  ;;  %v37_v20 = vpack.c.bf16 %v36_v19, %v35_v18  ;;  %v256_v21 = vld [vmem:[%s469_s0 + $0x8] sm:$0xff]  ;;  %v224_v25 = vld [vmem:[%s471_s2] sm:$0xf] }
  0x15   :  { %192 = vmatpush1.bf16.msra.mxu1 %v373_v8  ;;  %150 = vmatprep.subr.bf16.mxu0 %v374_v9  ;;  %v228_v24 = vsub.s32 0, %v227_v23  ;;  %v232_v26 = vsub.s32 1, %v227_v23  ;;  %v254_v27 = vld [vmem:[%s473_s4] sm:$0xf]  ;;  %v236_v28 = vsub.s32 2, %v227_v23  ;;  %v240_v33 = vsub.s32 3, %v227_v23 }
  0x16   :  { %193 = vmatprep.subr.bf16.mxu1 %v376_v10  ;;  %277 = vperm.xlu0 %358, %v256_v21   ;;  %v297_v46 = vadd.s32 128, %v296_v34  ;;  %v301_v51 = vadd.s32 256, %v296_v34  ;;  %v305_v58 = vadd.s32 384, %v296_v34 }
  0x17   :  { %v229_v30 = vrot.slane %v224_v25, %v228_v24  ;;  %v260_v31 = vrot.slane %v254_v27, %v228_v24  ;;  %v264_v32 = vrot.slane %v254_v27, %v232_v26  ;;  %v233_v35 = vrot.slane %v224_v25, %v232_v26 }
  0x18   :  { %151 = vmatpush1.bf16.msra.mxu0 %v378_v11  ;;  %v237_v38 = vrot.slane %v224_v25, %v236_v28  ;;  %v268_v40 = vrot.slane %v254_v27, %v236_v28  ;;  %v241_v43 = vrot.slane %v224_v25, %v240_v33  ;;  %v272_v44 = vrot.slane %v254_v27, %v240_v33 }
  0x19   :  { %194 = vmatpush1.bf16.msra.mxu1 %v379_v12  ;;  %152 = vmatprep.subr.bf16.mxu0 %v380_v13 }
  0x1a   :  { %195 = vmatprep.subr.bf16.mxu1 %v382_v14 }
  0x1c   :  { %153 = vmatpush1.bf16.msra.mxu0 %v384_v15 }
  0x1d   :  { %196 = vmatpush1.bf16.msra.mxu1 %v385_v17 }
  0x1f   :  { %352 = vmatmul.mubr.msk.bf16.vlgmr.msra.gmra.mxu0 %vm134_vm0, %v37_v20 }
  0x20   :  { %353 = vmatmul.mubr.msk.bf16.vlgmr.msra.gmra.mxu1 %vm134_vm0, %v37_v20 }
  0x8d   :  { %v275_v29 = vpop.permute.xlu0 %274 }
  0x8e   :  { %vm279_vm1 = vcmp.eq.s32.totalorder %v260_v31, %v275_v29  ;;  %vm280_vm2 = vcmp.eq.s32.totalorder %v264_v32, %v275_v29  ;;  %vm281_vm3 = vcmp.eq.s32.totalorder %v268_v40, %v275_v29  ;;  %vm282_vm5 = vcmp.eq.s32.totalorder %v272_v44, %v275_v29 }
  0x91   :  { %v278_v47 = vpop.permute.xlu0 %277 }
  0x92   :  { %vm283_vm6 = vcmp.eq.s32.totalorder %v260_v31, %v278_v47  ;;  %vm285_vm7 = vcmp.eq.s32.totalorder %v268_v40, %v278_v47  ;;  %vm284_vm8 = vcmp.eq.s32.totalorder %v264_v32, %v278_v47  ;;  %vm286_vm12 = vcmp.eq.s32.totalorder %v272_v44, %v278_v47 }
  0xdf   :  { %v172_v36 = vpop.f32.mrf.mxu0 }
  0xe0   :  { %v215_v37 = vpop.f32.mrf.mxu1  ;;  %v246_v39 = vsub.f32 %v229_v30, %v172_v36 }
  0xe1   :  { %v174_v41 = vpop.f32.mrf.mxu0  ;;  %v248_v48 = vsub.f32 %v237_v38, %v215_v37 }
  0xe2   :  { %v217_v42 = vpop.f32.mrf.mxu1  ;;  %v247_v45 = vsub.f32 %v233_v35, %v174_v41  ;;  %v287_v52 = vsel %vm279_vm1, %v246_v39, inf }
  0xe3   :  { %v176_v49 = vpop.f32.mrf.mxu0  ;;  %v249_v55 = vsub.f32 %v241_v43, %v217_v42  ;;  %v289_v62 = vsel %vm281_vm3, %v248_v48, inf }
  0xe4   :  { %v219_v50 = vpop.f32.mrf.mxu1  ;;  %v288_v53 = vsel %vm280_vm2, %v247_v45, inf  ;;  %v250_v54 = vsub.f32 %v229_v30, %v176_v49 }
  0xe5   :  { %vm298_vm4 = vcmp.le.f32.partialorder %v287_v52, %v288_v53  ;;  %v178_v56 = vpop.f32.mrf.mxu0  ;;  %v252_v60 = vsub.f32 %v237_v38, %v219_v50  ;;  %v290_v3 = vsel %vm282_vm5, %v249_v55, inf }
  0xe6   :  { %v221_v57 = vpop.f32.mrf.mxu1  ;;  %v300_v59 = vsel %vm298_vm4, %v296_v34, %v297_v46  ;;  %v251_v61 = vsub.f32 %v233_v35, %v178_v56  ;;  %v299_v63 = vsel %vm298_vm4, %v287_v52, %v288_v53  ;;  %v291_v0 = vsel %vm283_vm6, %v250_v54, inf }
  0xe7   :  { %v253_v2 = vsub.f32 %v241_v43, %v221_v57  ;;  %vm302_vm9 = vcmp.le.f32.partialorder %v299_v63, %v289_v62  ;;  %v293_v6 = vsel %vm285_vm7, %v252_v60, inf }
  0xe8   :  { %v292_v1 = vsel %vm284_vm8, %v251_v61, inf  ;;  %v303_v4 = vsel %vm302_vm9, %v299_v63, %v289_v62  ;;  %v304_v5 = vsel %vm302_vm9, %v300_v59, %v301_v51 }
  0xe9   :  { %vm314_vm10 = vcmp.le.f32.partialorder %v291_v0, %v292_v1  ;;  %vm306_vm11 = vcmp.le.f32.partialorder %v303_v4, %v290_v3  ;;  %v294_v11 = vsel %vm286_vm12, %v253_v2, inf }
  0xea   :  { %v315_v7 = vsel %vm314_vm10, %v291_v0, %v292_v1  ;;  %v316_v8 = vsel %vm314_vm10, %v296_v34, %v297_v46  ;;  %v307_v9 = vsel %vm306_vm11, %v303_v4, %v290_v3  ;;  %v308_v10 = vsel %vm306_vm11, %v304_v5, %v305_v58 }
  0xeb   :  { %vm317_vm13 = vcmp.le.f32.partialorder %v315_v7, %v293_v6  ;;  %309 = vmin.index.xlane.f32.xlu1 %v307_v9 }
  0xec   :  { %v318_v12 = vsel %vm317_vm13, %v315_v7, %v293_v6  ;;  %v319_v13 = vsel %vm317_vm13, %v316_v8, %v301_v51 }
  0xed   :  { %vm320_vm14 = vcmp.le.f32.partialorder %v318_v12, %v294_v11 }
  0xee   :  { %v321_v14 = vsel %vm320_vm14, %v318_v12, %v294_v11  ;;  %v322_v15 = vsel %vm320_vm14, %v319_v13, %v305_v58 }
  0xef   :  { %323 = vmin.index.xlane.f32.xlu1 %v321_v14 }
 0x174   :  { %v310_v16 = vpop.xlane.xlu1 %309 }
 0x175   :  { %359 = vset.pattern.permute.xlu0 %v310_v16 }
 0x178   :  { %v324_v17 = vpop.xlane.xlu1 %323 }
 0x179   :  { %312 = vperm.xlu0 %359, %v308_v10   ;;  %360 = vset.pattern.permute.xlu1 %v324_v17 }
 0x17d   :  { %361 = vset.pattern.permute.xlu0 %v324_v17  ;;  %326 = vperm.xlu1 %360, %v322_v15  }
 0x1f4   :  { %v313_v18 = vpop.permute.xlu0 %312 }
 0x1f5   :  { %329 = vst.msk [vmem:[%s474_s5] sm:$0xff] %vm328_vm15, %v313_v18 }
 0x1f8   :  { %v327_v19 = vpop.permute.xlu1 %326 }
 0x1f9   :  { %330 = vst.msk [vmem:[%s474_s5 + $0x8] sm:$0xff] %vm328_vm15, %v327_v19 }
 0x1fa   :  { %335 = vsyncpa [#allocation3], 1 }

</bundles_post_ra>
